<compile_context>
chip_gen: v7x
topology: tpu7x:2x2x1
jax: 0.10.0
libtpu: 0.0.40
codegen_flags: <defaults>
</compile_context>

<pallas_src>
import functools
import math

import jax
import jax.numpy as jnp
from jax.experimental import pallas as pl
from jax.experimental.pallas import tpu as pltpu


def _round_up(x, m):
    return (x + m - 1) // m * m


def _pad_dims(K, N):
    """Padded K/N and tile sizes (256 where the padded dim allows, else 128)."""
    Kp = _round_up(K, 128)
    Np = _round_up(N, 128)
    tk = 256 if Kp % 256 == 0 else 128
    tn = 256 if Np % 256 == 0 else 128
    return Kp, Np, tk, tn


# ------------------------------------------------ fused matmul + epilogue ---
def _fused_mm_kernel(*refs, add_res, do_bn, relu, m_valid, eps):
    """(Mp,K)@(K,N) with bias / batch-norm / residual / ReLU epilogue.

    Grid is (j, k) with k (reduction) innermost; the f32 output block is the
    accumulator (resident across k).  The epilogue runs once, at the last k.
    """
    if add_res:
        a_ref, b_ref, bias_ref, r_ref, o_ref = refs
    else:
        a_ref, b_ref, bias_ref, o_ref = refs
        r_ref = None

    k = pl.program_id(1)

    @pl.when(k == 0)
    def _():
        o_ref[...] = jnp.zeros_like(o_ref)

    o_ref[...] += jnp.dot(a_ref[...], b_ref[...],
                          preferred_element_type=jnp.float32)

    @pl.when(k == pl.num_programs(1) - 1)
    def _():
        y = o_ref[...] + bias_ref[...]
        if do_bn:
            # Training-mode BatchNorm (biased variance), gamma=1 / beta=0.
            # Padded rows (>= m_valid) are masked out of the statistics.
            inv_m = 1.0 / m_valid
            mean = jnp.sum(y, axis=0, keepdims=True) * inv_m
            rows = jax.lax.broadcasted_iota(jnp.int32, y.shape, 0)
            d = jnp.where(rows < m_valid, y - mean, 0.0)
            var = jnp.sum(d * d, axis=0, keepdims=True) * inv_m
            y = (y - mean) * jax.lax.rsqrt(var + eps)
        if add_res:
            y = y + r_ref[...]
        if relu:
            y = jnp.maximum(y, 0.0)
        o_ref[...] = y


def fused_matmul(a, wp, *, do_bn, relu, residual=None, eps=1e-5):
    """a: (M, K) f32/bf16 rows; wp: prepped weight dict.  Returns (M, n) f32."""
    M, K = a.shape
    assert K == wp["k"], (K, wp["k"])
    Kp, Np, tk, tn = wp["kp"], wp["np_"], wp["tk"], wp["tn"]
    # bf16 A operand -> pad M to a multiple of 16 (sublane packing).
    Mp = _round_up(max(M, 16), 16)

    a_p = jnp.zeros((Mp, Kp), jnp.bfloat16).at[:M, :K].set(a.astype(jnp.bfloat16))
    operands = [a_p, wp["w"], wp["b"]]
    in_specs = [
        pl.BlockSpec((Mp, tk), lambda j, k: (0, k)),
        pl.BlockSpec((tk, tn), lambda j, k: (k, j)),
        pl.BlockSpec((1, tn), lambda j, k: (0, j)),
    ]
    add_res = residual is not None
    if add_res:
        r_p = jnp.zeros((Mp, Np), jnp.float32).at[:M, :residual.shape[1]].set(
            residual.astype(jnp.float32))
        operands.append(r_p)
        in_specs.append(pl.BlockSpec((Mp, tn), lambda j, k: (0, j)))

    kern = functools.partial(_fused_mm_kernel, add_res=add_res, do_bn=do_bn,
                             relu=relu, m_valid=M, eps=eps)
    out = pl.pallas_call(
        kern,
        out_shape=jax.ShapeDtypeStruct((Mp, Np), jnp.float32),
        grid_spec=pltpu.PrefetchScalarGridSpec(
            num_scalar_prefetch=0,
            grid=(Np // tn, Kp // tk),
            in_specs=in_specs,
            out_specs=pl.BlockSpec((Mp, tn), lambda j, k: (0, j)),
        ),
        compiler_params=pltpu.CompilerParams(
            dimension_semantics=("parallel", "arbitrary"),
            vmem_limit_bytes=48 * 1024 * 1024),
    )(*operands)
    return out[:M, :wp["n"]]


# -------------------------------------------------------- conv via im2col ---
def conv_bn_act(x, wp, *, stride, padding, do_bn, relu, residual=None):
    """x: NHWC f32.  Fused conv (+bias) (+BN) (+residual) (+ReLU)."""
    N, H, W, Cin = x.shape
    KH, KW, Cout = wp["kh"], wp["kw"], wp["n"]
    OH = (H + 2 * padding - KH) // stride + 1
    OW = (W + 2 * padding - KW) // stride + 1
    xp = x if padding == 0 else jnp.pad(
        x, ((0, 0), (padding, padding), (padding, padding), (0, 0)))
    cols = []
    for kh in range(KH):
        for kw in range(KW):
            cols.append(xp[:, kh:kh + stride * (OH - 1) + 1:stride,
                           kw:kw + stride * (OW - 1) + 1:stride, :])
    a = jnp.concatenate(cols, axis=-1).reshape(N * OH * OW, KH * KW * Cin)
    r2d = None if residual is None else residual.reshape(N * OH * OW, Cout)
    out = fused_matmul(a, wp, do_bn=do_bn, relu=relu, residual=r2d)
    return out.reshape(N, OH, OW, Cout)


# ----------------------------------------------------------- model pieces ---
def residual_block(x, p, downsampling):
    stride = 2 if downsampling else 1
    cin = x.shape[-1]
    cout = p["conv1"]["n"]

    # conv1 -> BN -> ReLU (fused)
    out = conv_bn_act(x, p["conv1"], stride=stride, padding=1,
                      do_bn=True, relu=True)
    # shortcut (projection path): 1x1 conv -> BN (fused)
    if cin != cout:
        # TODO(synk): PyTorch re-creates this shortcut conv + BN with fresh
        # random weights on every forward call; here it is a fixed parameter.
        res = conv_bn_act(x, p["short"], stride=stride, padding=0,
                          do_bn=True, relu=False)
    else:
        res = x
    # conv2 -> BN -> +residual -> ReLU (fused)
    out = conv_bn_act(out, p["conv2"], stride=1, padding=1,
                      do_bn=True, relu=True, residual=res)
    return out


BLOCK_CFG = ([(64, 64, False)] * 3
             + [(64, 128, True)] + [(128, 128, False)] * 3
             + [(128, 256, True)] + [(256, 256, False)] * 5
             + [(256, 512, True)] + [(512, 512, False)] * 2)


def resnet34_forward(x_nchw, params):
    x = jnp.transpose(x_nchw, (0, 2, 3, 1)).astype(jnp.float32)  # NCHW -> NHWC
    # stem: 7x7 s2 conv with bias (no BN follows, so bias is kept)
    x = conv_bn_act(x, params["stem"], stride=2, padding=2,
                    do_bn=False, relu=False)
    # AvgPool2d(3, stride=2, padding=1) as a constant-weight conv (same kernel)
    x = conv_bn_act(x, params["pool"], stride=2, padding=1,
                    do_bn=False, relu=False)
    for blk, (_cin, _cout, ds) in zip(params["blocks"], BLOCK_CFG):
        x = residual_block(x, blk, ds)
    # AdaptiveAvgPool2d(1) + Flatten (tiny; per review, plain mean is cheaper
    # than a pallas_call with 2 useful sublanes)
    feats = jnp.mean(x, axis=(1, 2))                         # (N, 512)
    logits = fused_matmul(feats, params["fc"], do_bn=False, relu=False)
    return logits


# --------------------------------------------------------- parameter prep ---
class _KeyGen:
    def __init__(self, key):
        self.key = key

    def __call__(self):
        self.key, sub = jax.random.split(self.key)
        return sub


def _prep_mm(wm, bias=None, kh=1, kw=1):
    """Pre-pad + pre-cast a (K, N) weight matrix (and bias) once at init."""
    K, N = wm.shape
    Kp, Np, tk, tn = _pad_dims(K, N)
    w_p = jnp.zeros((Kp, Np), jnp.bfloat16).at[:K, :N].set(
        wm.astype(jnp.bfloat16))
    b_p = jnp.zeros((1, Np), jnp.float32)
    if bias is not None:
        b_p = b_p.at[0, :N].set(bias.astype(jnp.float32))
    return dict(w=w_p, b=b_p, k=K, n=N, kp=Kp, np_=Np, tk=tk, tn=tn,
                kh=kh, kw=kw)


def _prep_conv(w, bias=None):
    """w: (Cout, Cin, KH, KW) PyTorch layout -> matmul layout, padded, bf16."""
    Cout, Cin, KH, KW = w.shape
    wm = jnp.transpose(w, (2, 3, 1, 0)).reshape(KH * KW * Cin, Cout)
    return _prep_mm(wm, bias, kh=KH, kw=KW)


def _init_conv(kg, cout, cin, kh, kw):
    # matches ResNet34._init_weights: normal(0, sqrt(2 / (k*k*out_channels)))
    n = kh * kw * cout
    w = jax.random.normal(kg(), (cout, cin, kh, kw), jnp.float32) * math.sqrt(2.0 / n)
    bound = 1.0 / math.sqrt(cin * kh * kw)
    b = jax.random.uniform(kg(), (cout,), jnp.float32, -bound, bound)
    return w, b


def init_params(key, num_classes):
    kg = _KeyGen(key)
    params = {}

    w, b = _init_conv(kg, 64, 3, 7, 7)
    params["stem"] = _prep_conv(w, b)

    # 3x3 average pool as a (9*64, 64) constant block-diagonal 1/9 weight.
    pool_w = jnp.tile(jnp.eye(64, dtype=jnp.float32), (9, 1)) * (1.0 / 9.0)
    params["pool"] = _prep_mm(pool_w, None, kh=3, kw=3)

    blocks = []
    for cin, cout, _ds in BLOCK_CFG:
        blk = {}
        # Conv biases before training-mode BatchNorm cancel exactly -> dropped.
        w, _ = _init_conv(kg, cout, cin, 3, 3)
        blk["conv1"] = _prep_conv(w)
        w, _ = _init_conv(kg, cout, cout, 3, 3)
        blk["conv2"] = _prep_conv(w)
        if cin != cout:
            w, _ = _init_conv(kg, cout, cin, 1, 1)
            blk["short"] = _prep_conv(w)
        blocks.append(blk)
    params["blocks"] = blocks

    bound = 1.0 / math.sqrt(512)
    fc_w = jax.random.uniform(kg(), (num_classes, 512), jnp.float32, -bound, bound)
    fc_b = jax.random.uniform(kg(), (num_classes,), jnp.float32, -bound, bound)
    params["fc"] = _prep_mm(fc_w.T, fc_b)
    return params


# -------------------------------------------------------------------- main --
if __name__ == "__main__":
    num_classes = 10
    root = jax.random.PRNGKey(0)
    k_params, k_x = jax.random.split(root)
    params = init_params(k_params, num_classes)
    x = jax.random.normal(k_x, (2, 3, 32, 32), jnp.float32)  # NCHW like PyTorch

    logits = resnet34_forward(x, params)
    logits = jax.block_until_ready(logits)
    assert logits.shape == (2, num_classes)
    assert bool(jnp.all(jnp.isfinite(logits)))
    print("KERNEL_OK")
</pallas_src>

<mosaic_0001>
module attributes {stable_mosaic.version = 11 : i64} {
  func.func @_fused_mm_kernel(%arg0: i32, %arg1: i32, %arg2: memref<464x256xbf16, #tpu.memory_space<vmem>>, %arg3: memref<256x128xbf16, #tpu.memory_space<vmem>>, %arg4: memref<1x128xf32, #tpu.memory_space<vmem>>, %arg5: memref<464x128xf32, #tpu.memory_space<vmem>>) attributes {dimension_semantics = [#tpu.dimension_semantics<parallel>, #tpu.dimension_semantics<arbitrary>], iteration_bounds = array<i64: 1, 1>, scalar_prefetch = 0 : i64, scratch_operands = 0 : i64, tpu.core_type = #tpu.core_type<tc>, window_params = [{transform_indices = @transform_0, window_bounds = array<i64: 464, 256>}, {transform_indices = @transform_1, window_bounds = array<i64: 256, 128>}, {transform_indices = @transform_2, window_bounds = array<i64: 1, 128>}, {transform_indices = @transform_3, window_bounds = array<i64: 464, 128>}]} {
    %c0_i32 = arith.constant 0 : i32
    %0 = arith.cmpi eq, %arg1, %c0_i32 : i32
    %1 = arith.extui %0 : i1 to i32
    %c0_i32_0 = arith.constant 0 : i32
    %2 = arith.cmpi ne, %1, %c0_i32_0 : i32
    scf.if %2 {
      %cst_10 = arith.constant 0.000000e+00 : f32
      %12 = vector.broadcast %cst_10 : f32 to vector<464x128xf32>
      %c0_11 = arith.constant 0 : index
      %c0_12 = arith.constant 0 : index
      %13 = vector.load %arg5[%c0_11, %c0_12] : memref<464x128xf32, #tpu.memory_space<vmem>>, vector<464x128xf32>
      tpu.vector_store %arg5[%c0_11, %c0_12], %12 {strides = array<i32>} : memref<464x128xf32, #tpu.memory_space<vmem>>, vector<464x128xf32>,
    } else {
    }
    %c0 = arith.constant 0 : index
    %c0_1 = arith.constant 0 : index
    %3 = vector.load %arg5[%c0, %c0_1] : memref<464x128xf32, #tpu.memory_space<vmem>>, vector<464x128xf32>
    %c0_2 = arith.constant 0 : index
    %c0_3 = arith.constant 0 : index
    %4 = vector.load %arg2[%c0_2, %c0_3] : memref<464x256xbf16, #tpu.memory_space<vmem>>, vector<464x256xbf16>
    %c0_4 = arith.constant 0 : index
    %c0_5 = arith.constant 0 : index
    %5 = vector.load %arg3[%c0_4, %c0_5] : memref<256x128xbf16, #tpu.memory_space<vmem>>, vector<256x128xbf16>
    %cst = arith.constant dense<0.000000e+00> : vector<464x128xf32>
    %6 = tpu.matmul %4, %5, %cst {dimension_numbers = #tpu.dot_dimension_numbers<[1], [0], [0], [1], [0, 0, 1, 1], [], []>} : vector<464x256xbf16>, vector<256x128xbf16>, vector<464x128xf32> -> vector<464x128xf32>
    %7 = arith.addf %3, %6 : vector<464x128xf32>
    %c0_6 = arith.constant 0 : index
    %c0_7 = arith.constant 0 : index
    %8 = vector.load %arg5[%c0_6, %c0_7] : memref<464x128xf32, #tpu.memory_space<vmem>>, vector<464x128xf32>
    tpu.vector_store %arg5[%c0_6, %c0_7], %7 {strides = array<i32>} : memref<464x128xf32, #tpu.memory_space<vmem>>, vector<464x128xf32>,
    %c0_i32_8 = arith.constant 0 : i32
    %9 = arith.cmpi eq, %arg1, %c0_i32_8 : i32
    %10 = arith.extui %9 : i1 to i32
    %c0_i32_9 = arith.constant 0 : i32
    %11 = arith.cmpi ne, %10, %c0_i32_9 : i32
    scf.if %11 {
      %c0_10 = arith.constant 0 : index
      %c0_11 = arith.constant 0 : index
      %12 = vector.load %arg5[%c0_10, %c0_11] : memref<464x128xf32, #tpu.memory_space<vmem>>, vector<464x128xf32>
      %c0_12 = arith.constant 0 : index
      %c0_13 = arith.constant 0 : index
      %13 = vector.load %arg4[%c0_12, %c0_13] : memref<1x128xf32, #tpu.memory_space<vmem>>, vector<1x128xf32>
      %14 = vector.broadcast %13 : vector<1x128xf32> to vector<464x128xf32>
      %15 = arith.addf %12, %14 : vector<464x128xf32>
      %c0_14 = arith.constant 0 : index
      %c0_15 = arith.constant 0 : index
      %16 = vector.load %arg5[%c0_14, %c0_15] : memref<464x128xf32, #tpu.memory_space<vmem>>, vector<464x128xf32>
      tpu.vector_store %arg5[%c0_14, %c0_15], %15 {strides = array<i32>} : memref<464x128xf32, #tpu.memory_space<vmem>>, vector<464x128xf32>,
    } else {
    }
    return
  }
  func.func @transform_0(%arg0: i32, %arg1: i32) -> (i32, i32) {
    %c0_i32 = arith.constant 0 : i32
    %c0_i32_0 = arith.constant 0 : i32
    return %c0_i32, %arg1 : i32, i32
  }
  func.func @transform_1(%arg0: i32, %arg1: i32) -> (i32, i32) {
    %c0_i32 = arith.constant 0 : i32
    return %arg1, %arg0 : i32, i32
  }
  func.func @transform_2(%arg0: i32, %arg1: i32) -> (i32, i32) {
    %c0_i32 = arith.constant 0 : i32
    %c0_i32_0 = arith.constant 0 : i32
    return %c0_i32, %arg0 : i32, i32
  }
  func.func @transform_3(%arg0: i32, %arg1: i32) -> (i32, i32) {
    %c0_i32 = arith.constant 0 : i32
    %c0_i32_0 = arith.constant 0 : i32
    return %c0_i32, %arg0 : i32, i32
  }
}

</mosaic_0001>

<bundles_post_ra>
// kernel: tpu_custom_call.1
= control target key start
LH: loop header
LB: loop body
LE: loop exit
PB: predicated region body
PF: predicated region fallthrough
CT: control target
= control target key end

     0   :  { %8 = vsyncpa [#allocation3], 0  ;;  %s1679_s0 = inlined_call_operand.hbm [shape: bf16[464,256], index: 0, kind: input, shape index: {}]   ;;  %s1680_s1 = inlined_call_operand.hbm [shape: bf16[256,128], index: 1, kind: input, shape index: {}]   ;;  %s1681_s2 = inlined_call_operand.vmem [shape: f32[1,128], index: 2, kind: input, shape index: {}]   ;;  %s1682_s3 = inlined_call_operand.hbm [shape: f32[464,128], index: 3, kind: output, shape index: {}]  }
   0x1   :  { %9 = vsyncpa [#allocation6], 0 }
   0x2   :  { %10 = vsyncpa [#allocation4], 0  ;;  %s1514_s12 = smov [#allocation2]   ;;  %s1442_s16 = scalar_lea.hbm %s1679_s0, 7424 }
   0x3   :  { %s16_s13 = sshll.u32 %s1514_s12, 4  ;;  %p1443_p0 = scmp.ne.s32.totalorder %s1679_s0, %s1442_s16  ;;  %s17_s13 = int_to_ptr.vmem [resolvable:$true] %s16_s13 }
   0x4   :  { %p1446_p1 = scmp.lt.u32.totalorder %s1442_s16, %s1679_s0 }
   0x6   :  { %p1448_p2 = pnand %p1446_p1, %p1443_p0 }
   0x8   :  { %1451 = shalt.err (!%p1448_p2)
}
   0x9   :  { %s1452_s21 = scalar_lea.vmem %s17_s13, 7424  ;;  %p1457_p4 = scmp.lt.s32.totalorder %s17_s13, %s17_s13 }
   0xa   :  { %p1453_p3 = scmp.ne.s32.totalorder %s17_s13, %s1452_s21  ;;  %p1458_p5 = scmp.lt.s32.totalorder %s1452_s21, %s1452_s21 }
   0xc   :  { %p1459_p6 = por %p1458_p5, %p1457_p4 }
   0xe   :  { %p1460_p7 = pnand %p1459_p6, %p1453_p3 }
  0x10   :  { %1463 = shalt.err (!%p1460_p7)
}
  0x11   :  { %s1515_s22 = smov 128   ;;  %s1516_s23 = smov 8  }
  0x12   :  { %22 = dma.hbm_to_vmem [thread:$0]  %s1679_s0, 7424, %s17_s13, [#allocation3], %s1515_s22, %s1515_s22, %s1516_s23  }
  0x13   :  { %s1517_s26 = smov [#allocation5]   ;;  %s1464_s30 = scalar_lea.hbm %s1680_s1, 2048 }
  0x14   :  { %s28_s27 = sshll.u32 %s1517_s26, 4  ;;  %p1465_p8 = scmp.ne.s32.totalorder %s1680_s1, %s1464_s30  ;;  %s29_s27 = int_to_ptr.vmem [resolvable:$true] %s28_s27 }
  0x15   :  { %p1468_p9 = scmp.lt.u32.totalorder %s1464_s30, %s1680_s1 }
  0x17   :  { %p1470_p10 = pnand %p1468_p9, %p1465_p8 }
  0x19   :  { %1473 = shalt.err (!%p1470_p10)
}
  0x1a   :  { %s1474_s8 = scalar_lea.vmem %s29_s27, 2048  ;;  %p1479_p12 = scmp.lt.s32.totalorder %s29_s27, %s29_s27 }
  0x1b   :  { %p1475_p11 = scmp.ne.s32.totalorder %s29_s27, %s1474_s8  ;;  %p1480_p13 = scmp.lt.s32.totalorder %s1474_s8, %s1474_s8 }
  0x1d   :  { %p1481_p0 = por %p1480_p13, %p1479_p12 }
  0x1f   :  { %p1482_p1 = pnand %p1481_p0, %p1475_p11 }
  0x21   :  { %1485 = shalt.err (!%p1482_p1)
}
  0x22   :  { %s1518_s0 = smov 64   ;;  %s1519_s9 = smov 4  }
  0x23   :  { %34 = dma.hbm_to_vmem [thread:$0]  %s1680_s1, 2048, %s29_s27, [#allocation6], %s1518_s0, %s1518_s0, %s1519_s9  }
  0x24   :  { %1508 = dma.done.wait [#allocation3], 7424  }
  0x25   :  { %1509 = vsyncadd [#allocation3], 4294959872 }
  0x26   :  { %1510 = dma.done.wait [#allocation6], 2048  }
  0x27   :  { %1511 = vsyncadd [#allocation6], 4294965248  ;;  %v1520_v0 = vmov 0   ;;  %v1339_v1 = vld [vmem:[#allocation5] sm:$0xff]   ;;  %v1340_v2 = vld [vmem:[#allocation5 + $0x8] sm:$0xff]  }
  0x28   :  { %640 = vmatprep.subr.bf16.mxu0 %v1520_v0  ;;  %1298 = vmatprep.subr.bf16.mxu1 %v1520_v0  ;;  %v1341_v3 = vld [vmem:[#allocation5 + $0x10] sm:$0xff]   ;;  %v1342_v4 = vld [vmem:[#allocation5 + $0x18] sm:$0xff]   ;;  %v1343_v5 = vld [vmem:[#allocation5 + $0x20] sm:$0xff]  }
  0x29   :  { %641 = vmatpush1.bf16.msra.mxu0 %v1339_v1  ;;  %1314 = vmatpush1.bf16.msra.mxu1 %v1339_v1  ;;  %v1357_v6 = vld [vmem:[#allocation2 + $0x4] ss:$8 sps:$4 sm:$0xff]   ;;  %v1344_v7 = vld [vmem:[#allocation5 + $0x28] sm:$0xff]   ;;  %v1347_v11 = vld [vmem:[#allocation5 + $0x40] sm:$0xff]  }
  0x2a   :  { %642 = vmatprep.subr.bf16.mxu0 %v1520_v0  ;;  %1299 = vmatprep.subr.bf16.mxu1 %v1520_v0  ;;  %v1360_v8 = vld [vmem:[#allocation2 + $0xf4] ss:$8 sps:$4 sm:$0xff]   ;;  %v1345_v9 = vld [vmem:[#allocation5 + $0x30] sm:$0xff]   ;;  %v1346_v10 = vld [vmem:[#allocation5 + $0x38] sm:$0xff]  }
  0x2b   :  { %672 = vmatprep.mubr.bf16.mxu0 %v1357_v6  ;;  %792 = vmatprep.mubr.bf16.mxu1 %v1360_v8  ;;  %v1348_v12 = vld [vmem:[#allocation5 + $0x48] sm:$0xff]   ;;  %v1349_v13 = vld [vmem:[#allocation5 + $0x50] sm:$0xff]   ;;  %v1350_v14 = vld [vmem:[#allocation5 + $0x58] sm:$0xff]  }
  0x2c   :  { %v1351_v15 = vld [vmem:[#allocation5 + $0x60] sm:$0xff]   ;;  %v1352_v16 = vld [vmem:[#allocation5 + $0x68] sm:$0xff]   ;;  %v1353_v17 = vld [vmem:[#allocation5 + $0x70] sm:$0xff]  }
  0x2d   :  { %643 = vmatpush1.bf16.msra.mxu0 %v1340_v2  ;;  %1315 = vmatpush1.bf16.msra.mxu1 %v1340_v2  ;;  %v1354_v18 = vld [vmem:[#allocation5 + $0x78] sm:$0xff]   ;;  %v1358_v20 = vld [vmem:[#allocation2 + $0xf0] ss:$8 sps:$4 sm:$0xff]   ;;  %v1361_v21 = vld [vmem:[#allocation2 + $0x14] ss:$8 sps:$4 sm:$0xff]  }
  0x2e   :  { %644 = vmatprep.subr.bf16.mxu0 %v1520_v0  ;;  %1300 = vmatprep.subr.bf16.mxu1 %v1520_v0  ;;  %v1355_v19 = vld [vmem:[#allocation2] ss:$8 sps:$4 sm:$0xff]   ;;  %v1364_v22 = vld [vmem:[#allocation2 + $0x104] ss:$8 sps:$4 sm:$0xff]   ;;  %v1363_v23 = vld [vmem:[#allocation2 + $0x10] ss:$8 sps:$4 sm:$0xff]  }
  0x2f   :  { %v1366_v24 = vld [vmem:[#allocation2 + $0x100] ss:$8 sps:$4 sm:$0xff]   ;;  %v1367_v25 = vld [vmem:[#allocation2 + $0x24] ss:$8 sps:$4 sm:$0xff]   ;;  %v1370_v26 = vld [vmem:[#allocation2 + $0x114] ss:$8 sps:$4 sm:$0xff]  }
  0x30   :  { %v1369_v27 = vld [vmem:[#allocation2 + $0x20] ss:$8 sps:$4 sm:$0xff]   ;;  %v1372_v28 = vld [vmem:[#allocation2 + $0x110] ss:$8 sps:$4 sm:$0xff]   ;;  %v1373_v29 = vld [vmem:[#allocation2 + $0x34] ss:$8 sps:$4 sm:$0xff]  }
  0x31   :  { %645 = vmatpush1.bf16.msra.mxu0 %v1341_v3  ;;  %1316 = vmatpush1.bf16.msra.mxu1 %v1341_v3  ;;  %v1376_v30 = vld [vmem:[#allocation2 + $0x124] ss:$8 sps:$4 sm:$0xff]   ;;  %v1375_v31 = vld [vmem:[#allocation2 + $0x30] ss:$8 sps:$4 sm:$0xff]   ;;  %v1378_v32 = vld [vmem:[#allocation2 + $0x120] ss:$8 sps:$4 sm:$0xff]  }
  0x32   :  { %646 = vmatprep.subr.bf16.mxu0 %v1520_v0  ;;  %1301 = vmatprep.subr.bf16.mxu1 %v1520_v0  ;;  %v1379_v33 = vld [vmem:[#allocation2 + $0x44] ss:$8 sps:$4 sm:$0xff]   ;;  %v1382_v34 = vld [vmem:[#allocation2 + $0x134] ss:$8 sps:$4 sm:$0xff]   ;;  %v1381_v35 = vld [vmem:[#allocation2 + $0x40] ss:$8 sps:$4 sm:$0xff]  }
  0x33   :  { %v1384_v36 = vld [vmem:[#allocation2 + $0x130] ss:$8 sps:$4 sm:$0xff]   ;;  %v1385_v37 = vld [vmem:[#allocation2 + $0x54] ss:$8 sps:$4 sm:$0xff]   ;;  %v1388_v38 = vld [vmem:[#allocation2 + $0x144] ss:$8 sps:$4 sm:$0xff]  }
  0x34   :  { %v1387_v39 = vld [vmem:[#allocation2 + $0x50] ss:$8 sps:$4 sm:$0xff]   ;;  %v1390_v40 = vld [vmem:[#allocation2 + $0x140] ss:$8 sps:$4 sm:$0xff]   ;;  %v1391_v41 = vld [vmem:[#allocation2 + $0x64] ss:$8 sps:$4 sm:$0xff]  }
  0x35   :  { %647 = vmatpush1.bf16.msra.mxu0 %v1342_v4  ;;  %1317 = vmatpush1.bf16.msra.mxu1 %v1342_v4  ;;  %v1394_v42 = vld [vmem:[#allocation2 + $0x154] ss:$8 sps:$4 sm:$0xff]   ;;  %v1393_v43 = vld [vmem:[#allocation2 + $0x60] ss:$8 sps:$4 sm:$0xff]   ;;  %v1396_v44 = vld [vmem:[#allocation2 + $0x150] ss:$8 sps:$4 sm:$0xff]  }
  0x36   :  { %648 = vmatprep.subr.bf16.mxu0 %v1520_v0  ;;  %1302 = vmatprep.subr.bf16.mxu1 %v1520_v0  ;;  %v1397_v45 = vld [vmem:[#allocation2 + $0x74] ss:$8 sps:$4 sm:$0xff]   ;;  %v1400_v46 = vld [vmem:[#allocation2 + $0x164] ss:$8 sps:$4 sm:$0xff]   ;;  %v1399_v47 = vld [vmem:[#allocation2 + $0x70] ss:$8 sps:$4 sm:$0xff]  }
  0x37   :  { %v1402_v48 = vld [vmem:[#allocation2 + $0x160] ss:$8 sps:$4 sm:$0xff]   ;;  %v1403_v49 = vld [vmem:[#allocation2 + $0x84] ss:$8 sps:$4 sm:$0xff]   ;;  %v1406_v50 = vld [vmem:[#allocation2 + $0x174] ss:$8 sps:$4 sm:$0xff]  }
  0x38   :  { %v1405_v51 = vld [vmem:[#allocation2 + $0x80] ss:$8 sps:$4 sm:$0xff]   ;;  %v1408_v52 = vld [vmem:[#allocation2 + $0x170] ss:$8 sps:$4 sm:$0xff]   ;;  %v1409_v53 = vld [vmem:[#allocation2 + $0x94] ss:$8 sps:$4 sm:$0xff]  }
  0x39   :  { %649 = vmatpush1.bf16.msra.mxu0 %v1343_v5  ;;  %1318 = vmatpush1.bf16.msra.mxu1 %v1343_v5  ;;  %v1412_v54 = vld [vmem:[#allocation2 + $0x184] ss:$8 sps:$4 sm:$0xff]   ;;  %v1411_v55 = vld [vmem:[#allocation2 + $0x90] ss:$8 sps:$4 sm:$0xff]   ;;  %v1414_v56 = vld [vmem:[#allocation2 + $0x180] ss:$8 sps:$4 sm:$0xff]  }
  0x3a   :  { %650 = vmatprep.subr.bf16.mxu0 %v1520_v0  ;;  %1303 = vmatprep.subr.bf16.mxu1 %v1520_v0  ;;  %v1415_v57 = vld [vmem:[#allocation2 + $0xa4] ss:$8 sps:$4 sm:$0xff]   ;;  %v1418_v58 = vld [vmem:[#allocation2 + $0x194] ss:$8 sps:$4 sm:$0xff]   ;;  %v1417_v59 = vld [vmem:[#allocation2 + $0xa0] ss:$8 sps:$4 sm:$0xff]  }
  0x3b   :  { %v1420_v60 = vld [vmem:[#allocation2 + $0x190] ss:$8 sps:$4 sm:$0xff]   ;;  %v1421_v61 = vld [vmem:[#allocation2 + $0xb4] ss:$8 sps:$4 sm:$0xff]   ;;  %v1424_v62 = vld [vmem:[#allocation2 + $0x1a4] ss:$8 sps:$4 sm:$0xff]  }
  0x3c   :  { %v1423_v63 = vld [vmem:[#allocation2 + $0xb0] ss:$8 sps:$4 sm:$0xff]   ;;  %v1427_v1 = vld [vmem:[#allocation2 + $0xc4] ss:$8 sps:$4 sm:$0xff]   ;;  %v1430_v2 = vld [vmem:[#allocation2 + $0x1b4] ss:$8 sps:$4 sm:$0xff]  }
  0x3d   :  { %651 = vmatpush1.bf16.msra.mxu0 %v1344_v7  ;;  %1319 = vmatpush1.bf16.msra.mxu1 %v1344_v7  ;;  %v1429_v3 = vld [vmem:[#allocation2 + $0xc0] ss:$8 sps:$4 sm:$0xff]   ;;  %v1432_v4 = vld [vmem:[#allocation2 + $0x1b0] ss:$8 sps:$4 sm:$0xff]   ;;  %v1433_v5 = vld [vmem:[#allocation2 + $0xd4] ss:$8 sps:$4 sm:$0xff]  }
  0x3e   :  { %652 = vmatprep.subr.bf16.mxu0 %v1520_v0  ;;  %1304 = vmatprep.subr.bf16.mxu1 %v1520_v0  ;;  %v1436_v6 = vld [vmem:[#allocation2 + $0x1c4] ss:$8 sps:$4 sm:$0xff]   ;;  %v1435_v7 = vld [vmem:[#allocation2 + $0xd0] ss:$8 sps:$4 sm:$0xff]   ;;  %v1438_v8 = vld [vmem:[#allocation2 + $0x1c0] ss:$8 sps:$4 sm:$0xff]  }
  0x41   :  { %653 = vmatpush1.bf16.msra.mxu0 %v1345_v9  ;;  %1320 = vmatpush1.bf16.msra.mxu1 %v1345_v9  ;;  %v1439_v9 = vld [vmem:[#allocation2 + $0xe4] ss:$8 sps:$4 sm:$0xff]  }
  0x42   :  { %654 = vmatprep.subr.bf16.mxu0 %v1520_v0  ;;  %1305 = vmatprep.subr.bf16.mxu1 %v1520_v0 }
  0x45   :  { %655 = vmatpush1.bf16.msra.mxu0 %v1346_v10  ;;  %1321 = vmatpush1.bf16.msra.mxu1 %v1346_v10  ;;  %v1441_v10 = vld [vmem:[#allocation2 + $0xe0] ss:$8 sps:$4 sm:$0xff]  }
  0x46   :  { %656 = vmatprep.subr.bf16.mxu0 %v1520_v0  ;;  %1306 = vmatprep.subr.bf16.mxu1 %v1520_v0 }
  0x49   :  { %657 = vmatpush1.bf16.msra.mxu0 %v1347_v11  ;;  %1322 = vmatpush1.bf16.msra.mxu1 %v1347_v11 }
  0x4a   :  { %658 = vmatprep.subr.bf16.mxu0 %v1520_v0  ;;  %1307 = vmatprep.subr.bf16.mxu1 %v1520_v0 }
  0x4d   :  { %659 = vmatpush1.bf16.msra.mxu0 %v1348_v12  ;;  %1323 = vmatpush1.bf16.msra.mxu1 %v1348_v12  ;;  %v1604_v12 = vld [vmem:[%s1681_s2] ss:$0 sm:$0xff]  ;;  %s1521_s2 = smov [#allocation7]  }
  0x4e   :  { %660 = vmatprep.subr.bf16.mxu0 %v1520_v0  ;;  %1308 = vmatprep.subr.bf16.mxu1 %v1520_v0  ;;  %s1210_s13 = sshll.u32 %s1521_s2, 4  ;;  %s1211_s13 = int_to_ptr.vmem [resolvable:$true] %s1210_s13 }
  0x4f   :  { %s1486_s14 = scalar_lea.vmem %s1211_s13, 7424  ;;  %p1491_p3 = scmp.lt.s32.totalorder %s1211_s13, %s1211_s13 }
  0x50   :  { %p1487_p2 = scmp.ne.s32.totalorder %s1211_s13, %s1486_s14  ;;  %p1492_p4 = scmp.lt.s32.totalorder %s1486_s14, %s1486_s14 }
  0x51   :  { %661 = vmatpush1.bf16.msra.mxu0 %v1349_v13  ;;  %1324 = vmatpush1.bf16.msra.mxu1 %v1349_v13 }
  0x52   :  { %662 = vmatprep.subr.bf16.mxu0 %v1520_v0  ;;  %1309 = vmatprep.subr.bf16.mxu1 %v1520_v0  ;;  %p1493_p5 = por %p1492_p4, %p1491_p3 }
  0x54   :  { %p1494_p6 = pnand %p1493_p5, %p1487_p2 }
  0x55   :  { %663 = vmatpush1.bf16.msra.mxu0 %v1350_v14  ;;  %1325 = vmatpush1.bf16.msra.mxu1 %v1350_v14 }
  0x56   :  { %664 = vmatprep.subr.bf16.mxu0 %v1520_v0  ;;  %1310 = vmatprep.subr.bf16.mxu1 %v1520_v0 }
  0x59   :  { %665 = vmatpush1.bf16.msra.mxu0 %v1351_v15  ;;  %1326 = vmatpush1.bf16.msra.mxu1 %v1351_v15 }
  0x5a   :  { %666 = vmatprep.subr.bf16.mxu0 %v1520_v0  ;;  %1311 = vmatprep.subr.bf16.mxu1 %v1520_v0 }
  0x5d   :  { %667 = vmatpush1.bf16.msra.mxu0 %v1352_v16  ;;  %1327 = vmatpush1.bf16.msra.mxu1 %v1352_v16 }
  0x5e   :  { %668 = vmatprep.subr.bf16.mxu0 %v1520_v0  ;;  %1312 = vmatprep.subr.bf16.mxu1 %v1520_v0 }
  0x61   :  { %669 = vmatpush1.bf16.msra.mxu0 %v1353_v17  ;;  %1328 = vmatpush1.bf16.msra.mxu1 %v1353_v17 }
  0x62   :  { %670 = vmatprep.subr.bf16.mxu0 %v1520_v0  ;;  %1313 = vmatprep.subr.bf16.mxu1 %v1520_v0  ;;  %v1426_v0 = vld [vmem:[#allocation2 + $0x1a0] ss:$8 sps:$4 sm:$0xff]  }
  0x65   :  { %671 = vmatpush1.bf16.msra.mxu0 %v1354_v18  ;;  %1329 = vmatpush1.bf16.msra.mxu1 %v1354_v18 }
  0x68   :  { %673 = vmatmul.mubr.bf16.vlgmr.msra.gmra.mrb[0].mxu0 %v1355_v19  ;;  %793 = vmatmul.mubr.bf16.vlgmr.msra.gmra.mrb[0].mxu1 %v1358_v20 }
  0x69   :  { %680 = vmatprep.mubr.bf16.mxu0 %v1361_v21  ;;  %800 = vmatprep.mubr.bf16.mxu1 %v1364_v22 }
  0x70   :  { %681 = vmatmul.mubr.bf16.gmra.mrb[4].mxu0 %v1363_v23  ;;  %801 = vmatmul.mubr.bf16.gmra.mrb[4].mxu1 %v1366_v24 }
  0x71   :  { %688 = vmatprep.mubr.bf16.mxu0 %v1367_v25  ;;  %808 = vmatprep.mubr.bf16.mxu1 %v1370_v26 }
  0x78   :  { %689 = vmatmul.mubr.bf16.gmra.mrb[8].mxu0 %v1369_v27  ;;  %809 = vmatmul.mubr.bf16.gmra.mrb[8].mxu1 %v1372_v28 }
  0x79   :  { %696 = vmatprep.mubr.bf16.mxu0 %v1373_v29  ;;  %816 = vmatprep.mubr.bf16.mxu1 %v1376_v30 }
  0x80   :  { %697 = vmatmul.mubr.bf16.gmra.mrb[12].mxu0 %v1375_v31  ;;  %817 = vmatmul.mubr.bf16.gmra.mrb[12].mxu1 %v1378_v32 }
  0x81   :  { %704 = vmatprep.mubr.bf16.mxu0 %v1379_v33  ;;  %824 = vmatprep.mubr.bf16.mxu1 %v1382_v34 }
  0x88   :  { %705 = vmatmul.mubr.bf16.gmra.mrb[16].mxu0 %v1381_v35  ;;  %825 = vmatmul.mubr.bf16.gmra.mrb[16].mxu1 %v1384_v36 }
  0x89   :  { %712 = vmatprep.mubr.bf16.mxu0 %v1385_v37  ;;  %832 = vmatprep.mubr.bf16.mxu1 %v1388_v38 }
  0x90   :  { %713 = vmatmul.mubr.bf16.gmra.mrb[20].mxu0 %v1387_v39  ;;  %833 = vmatmul.mubr.bf16.gmra.mrb[20].mxu1 %v1390_v40 }
  0x91   :  { %720 = vmatprep.mubr.bf16.mxu0 %v1391_v41  ;;  %840 = vmatprep.mubr.bf16.mxu1 %v1394_v42 }
  0x98   :  { %721 = vmatmul.mubr.bf16.gmra.mrb[24].mxu0 %v1393_v43  ;;  %841 = vmatmul.mubr.bf16.gmra.mrb[24].mxu1 %v1396_v44 }
  0x99   :  { %728 = vmatprep.mubr.bf16.mxu0 %v1397_v45  ;;  %848 = vmatprep.mubr.bf16.mxu1 %v1400_v46 }
  0xa0   :  { %729 = vmatmul.mubr.bf16.gmra.mrb[28].mxu0 %v1399_v47  ;;  %849 = vmatmul.mubr.bf16.gmra.mrb[28].mxu1 %v1402_v48 }
  0xa1   :  { %736 = vmatprep.mubr.bf16.mxu0 %v1403_v49  ;;  %856 = vmatprep.mubr.bf16.mxu1 %v1406_v50 }
  0xa8   :  { %737 = vmatmul.mubr.bf16.gmra.mrb[32].mxu0 %v1405_v51  ;;  %857 = vmatmul.mubr.bf16.gmra.mrb[32].mxu1 %v1408_v52 }
  0xa9   :  { %744 = vmatprep.mubr.bf16.mxu0 %v1409_v53  ;;  %864 = vmatprep.mubr.bf16.mxu1 %v1412_v54 }
  0xb0   :  { %745 = vmatmul.mubr.bf16.gmra.mrb[36].mxu0 %v1411_v55  ;;  %865 = vmatmul.mubr.bf16.gmra.mrb[36].mxu1 %v1414_v56 }
  0xb1   :  { %752 = vmatprep.mubr.bf16.mxu0 %v1415_v57  ;;  %872 = vmatprep.mubr.bf16.mxu1 %v1418_v58 }
  0xb8   :  { %753 = vmatmul.mubr.bf16.gmra.mrb[40].mxu0 %v1417_v59  ;;  %873 = vmatmul.mubr.bf16.gmra.mrb[40].mxu1 %v1420_v60 }
  0xb9   :  { %760 = vmatprep.mubr.bf16.mxu0 %v1421_v61  ;;  %880 = vmatprep.mubr.bf16.mxu1 %v1424_v62 }
  0xc0   :  { %761 = vmatmul.mubr.bf16.gmra.mrb[44].mxu0 %v1423_v63  ;;  %881 = vmatmul.mubr.bf16.gmra.mrb[44].mxu1 %v1426_v0 }
  0xc1   :  { %768 = vmatprep.mubr.bf16.mxu0 %v1427_v1  ;;  %888 = vmatprep.mubr.bf16.mxu1 %v1430_v2 }
  0xc8   :  { %769 = vmatmul.mubr.bf16.gmra.mrb[48].mxu0 %v1429_v3  ;;  %889 = vmatmul.mubr.bf16.gmra.mrb[48].mxu1 %v1432_v4 }
  0xc9   :  { %776 = vmatprep.mubr.bf16.mxu0 %v1433_v5  ;;  %896 = vmatprep.mubr.bf16.mxu1 %v1436_v6 }
  0xd0   :  { %777 = vmatmul.mubr.bf16.gmra.mrb[52].mxu0 %v1435_v7  ;;  %897 = vmatmul.mubr.bf16.gmra.mrb[52].mxu1 %v1438_v8 }
  0xd1   :  { %784 = vmatprep.mubr.bf16.mxu0 %v1439_v9 }
  0xd8   :  { %785 = vmatmul.mubr.bf16.gmra.mrb[56].mxu0 %v1441_v10 }
 0x13b   :  { %v674_v11 = vpop.f32.mrb[0].mxu0  ;;  %v794_v13 = vpop.f32.mrb[0].mxu1 }
 0x13c   :  { %v676_v14 = vpop.f32.mrb[1].mxu0  ;;  %v796_v15 = vpop.f32.mrb[1].mxu1  ;;  %v1089_v18 = vadd.f32 %v1604_v12, %v674_v11  ;;  %v1119_v20 = vadd.f32 %v1604_v12, %v794_v13 }
 0x13d   :  { %v677_v16 = vpop.f32.mrb[2].mxu0  ;;  %v797_v17 = vpop.f32.mrb[2].mxu1 }
 0x13e   :  { %v679_v19 = vpop.f32.mrb[3].mxu0  ;;  %v799_v21 = vpop.f32.mrb[3].mxu1  ;;  %1147 = vst [vmem:[#allocation7] sm:$0xff] %v1089_v18  ;;  %v1090_v22 = vadd.f32 %v1604_v12, %v677_v16  ;;  %1177 = vst [vmem:[#allocation7 + $0xf0] sm:$0xff] %v1119_v20  ;;  %v1120_v23 = vadd.f32 %v1604_v12, %v797_v17 }
 0x140   :  { %1148 = vst [vmem:[#allocation7 + $0x8] sm:$0xff] %v1090_v22  ;;  %1178 = vst [vmem:[#allocation7 + $0xf8] sm:$0xff] %v1120_v23 }
 0x143   :  { %v682_v24 = vpop.f32.mrb[4].mxu0  ;;  %v802_v25 = vpop.f32.mrb[4].mxu1 }
 0x144   :  { %v684_v26 = vpop.f32.mrb[5].mxu0  ;;  %v804_v27 = vpop.f32.mrb[5].mxu1  ;;  %v1091_v30 = vadd.f32 %v1604_v12, %v682_v24  ;;  %v1121_v32 = vadd.f32 %v1604_v12, %v802_v25 }
 0x145   :  { %v685_v28 = vpop.f32.mrb[6].mxu0  ;;  %v805_v29 = vpop.f32.mrb[6].mxu1 }
 0x146   :  { %v687_v31 = vpop.f32.mrb[7].mxu0  ;;  %v807_v33 = vpop.f32.mrb[7].mxu1  ;;  %1149 = vst [vmem:[#allocation7 + $0x10] sm:$0xff] %v1091_v30  ;;  %v1092_v34 = vadd.f32 %v1604_v12, %v685_v28  ;;  %1179 = vst [vmem:[#allocation7 + $0x100] sm:$0xff] %v1121_v32  ;;  %v1122_v35 = vadd.f32 %v1604_v12, %v805_v29 }
 0x148   :  { %1150 = vst [vmem:[#allocation7 + $0x18] sm:$0xff] %v1092_v34  ;;  %1180 = vst [vmem:[#allocation7 + $0x108] sm:$0xff] %v1122_v35 }
 0x14b   :  { %v690_v36 = vpop.f32.mrb[8].mxu0  ;;  %v810_v37 = vpop.f32.mrb[8].mxu1 }
 0x14c   :  { %v692_v38 = vpop.f32.mrb[9].mxu0  ;;  %v812_v39 = vpop.f32.mrb[9].mxu1  ;;  %v1093_v42 = vadd.f32 %v1604_v12, %v690_v36  ;;  %v1123_v44 = vadd.f32 %v1604_v12, %v810_v37 }
 0x14d   :  { %v693_v40 = vpop.f32.mrb[10].mxu0  ;;  %v813_v41 = vpop.f32.mrb[10].mxu1 }
 0x14e   :  { %v695_v43 = vpop.f32.mrb[11].mxu0  ;;  %v815_v45 = vpop.f32.mrb[11].mxu1  ;;  %1151 = vst [vmem:[#allocation7 + $0x20] sm:$0xff] %v1093_v42  ;;  %v1094_v46 = vadd.f32 %v1604_v12, %v693_v40  ;;  %1181 = vst [vmem:[#allocation7 + $0x110] sm:$0xff] %v1123_v44  ;;  %v1124_v47 = vadd.f32 %v1604_v12, %v813_v41 }
 0x150   :  { %1152 = vst [vmem:[#allocation7 + $0x28] sm:$0xff] %v1094_v46  ;;  %1182 = vst [vmem:[#allocation7 + $0x118] sm:$0xff] %v1124_v47 }
 0x153   :  { %v698_v48 = vpop.f32.mrb[12].mxu0  ;;  %v818_v49 = vpop.f32.mrb[12].mxu1 }
 0x154   :  { %v700_v50 = vpop.f32.mrb[13].mxu0  ;;  %v820_v51 = vpop.f32.mrb[13].mxu1  ;;  %v1095_v54 = vadd.f32 %v1604_v12, %v698_v48  ;;  %v1125_v56 = vadd.f32 %v1604_v12, %v818_v49 }
 0x155   :  { %v701_v52 = vpop.f32.mrb[14].mxu0  ;;  %v821_v53 = vpop.f32.mrb[14].mxu1 }
 0x156   :  { %v703_v55 = vpop.f32.mrb[15].mxu0  ;;  %v823_v57 = vpop.f32.mrb[15].mxu1  ;;  %1153 = vst [vmem:[#allocation7 + $0x30] sm:$0xff] %v1095_v54  ;;  %v1096_v58 = vadd.f32 %v1604_v12, %v701_v52  ;;  %1183 = vst [vmem:[#allocation7 + $0x120] sm:$0xff] %v1125_v56  ;;  %v1126_v59 = vadd.f32 %v1604_v12, %v821_v53 }
 0x158   :  { %1154 = vst [vmem:[#allocation7 + $0x38] sm:$0xff] %v1096_v58  ;;  %1184 = vst [vmem:[#allocation7 + $0x128] sm:$0xff] %v1126_v59 }
 0x15b   :  { %v706_v60 = vpop.f32.mrb[16].mxu0  ;;  %v826_v61 = vpop.f32.mrb[16].mxu1 }
 0x15c   :  { %v708_v62 = vpop.f32.mrb[17].mxu0  ;;  %v828_v63 = vpop.f32.mrb[17].mxu1  ;;  %v1097_v2 = vadd.f32 %v1604_v12, %v706_v60  ;;  %v1127_v4 = vadd.f32 %v1604_v12, %v826_v61 }
 0x15d   :  { %v709_v0 = vpop.f32.mrb[18].mxu0  ;;  %v829_v1 = vpop.f32.mrb[18].mxu1 }
 0x15e   :  { %v711_v3 = vpop.f32.mrb[19].mxu0  ;;  %v831_v5 = vpop.f32.mrb[19].mxu1  ;;  %1155 = vst [vmem:[#allocation7 + $0x40] sm:$0xff] %v1097_v2  ;;  %v1098_v6 = vadd.f32 %v1604_v12, %v709_v0  ;;  %1185 = vst [vmem:[#allocation7 + $0x130] sm:$0xff] %v1127_v4  ;;  %v1128_v7 = vadd.f32 %v1604_v12, %v829_v1 }
 0x160   :  { %1156 = vst [vmem:[#allocation7 + $0x48] sm:$0xff] %v1098_v6  ;;  %1186 = vst [vmem:[#allocation7 + $0x138] sm:$0xff] %v1128_v7 }
 0x163   :  { %v714_v8 = vpop.f32.mrb[20].mxu0  ;;  %v834_v9 = vpop.f32.mrb[20].mxu1 }
 0x164   :  { %v716_v10 = vpop.f32.mrb[21].mxu0  ;;  %v836_v11 = vpop.f32.mrb[21].mxu1  ;;  %v1099_v15 = vadd.f32 %v1604_v12, %v714_v8  ;;  %v1129_v17 = vadd.f32 %v1604_v12, %v834_v9 }
 0x165   :  { %v717_v13 = vpop.f32.mrb[22].mxu0  ;;  %v837_v14 = vpop.f32.mrb[22].mxu1 }
 0x166   :  { %v719_v16 = vpop.f32.mrb[23].mxu0  ;;  %v839_v18 = vpop.f32.mrb[23].mxu1  ;;  %1157 = vst [vmem:[#allocation7 + $0x50] sm:$0xff] %v1099_v15  ;;  %v1100_v19 = vadd.f32 %v1604_v12, %v717_v13  ;;  %1187 = vst [vmem:[#allocation7 + $0x140] sm:$0xff] %v1129_v17  ;;  %v1130_v20 = vadd.f32 %v1604_v12, %v837_v14 }
 0x168   :  { %1158 = vst [vmem:[#allocation7 + $0x58] sm:$0xff] %v1100_v19  ;;  %1188 = vst [vmem:[#allocation7 + $0x148] sm:$0xff] %v1130_v20 }
 0x16b   :  { %v722_v21 = vpop.f32.mrb[24].mxu0  ;;  %v842_v22 = vpop.f32.mrb[24].mxu1 }
 0x16c   :  { %v724_v23 = vpop.f32.mrb[25].mxu0  ;;  %v844_v24 = vpop.f32.mrb[25].mxu1  ;;  %v1101_v27 = vadd.f32 %v1604_v12, %v722_v21  ;;  %v1131_v29 = vadd.f32 %v1604_v12, %v842_v22 }
 0x16d   :  { %v725_v25 = vpop.f32.mrb[26].mxu0  ;;  %v845_v26 = vpop.f32.mrb[26].mxu1 }
 0x16e   :  { %v727_v28 = vpop.f32.mrb[27].mxu0  ;;  %v847_v30 = vpop.f32.mrb[27].mxu1  ;;  %1159 = vst [vmem:[#allocation7 + $0x60] sm:$0xff] %v1101_v27  ;;  %v1102_v31 = vadd.f32 %v1604_v12, %v725_v25  ;;  %1189 = vst [vmem:[#allocation7 + $0x150] sm:$0xff] %v1131_v29  ;;  %v1132_v32 = vadd.f32 %v1604_v12, %v845_v26 }
 0x170   :  { %1160 = vst [vmem:[#allocation7 + $0x68] sm:$0xff] %v1102_v31  ;;  %1190 = vst [vmem:[#allocation7 + $0x158] sm:$0xff] %v1132_v32 }
 0x173   :  { %v730_v33 = vpop.f32.mrb[28].mxu0  ;;  %v850_v34 = vpop.f32.mrb[28].mxu1 }
 0x174   :  { %v732_v35 = vpop.f32.mrb[29].mxu0  ;;  %v852_v36 = vpop.f32.mrb[29].mxu1  ;;  %v1103_v39 = vadd.f32 %v1604_v12, %v730_v33  ;;  %v1133_v41 = vadd.f32 %v1604_v12, %v850_v34 }
 0x175   :  { %v733_v37 = vpop.f32.mrb[30].mxu0  ;;  %v853_v38 = vpop.f32.mrb[30].mxu1 }
 0x176   :  { %v735_v40 = vpop.f32.mrb[31].mxu0  ;;  %v855_v42 = vpop.f32.mrb[31].mxu1  ;;  %1161 = vst [vmem:[#allocation7 + $0x70] sm:$0xff] %v1103_v39  ;;  %v1104_v43 = vadd.f32 %v1604_v12, %v733_v37  ;;  %1191 = vst [vmem:[#allocation7 + $0x160] sm:$0xff] %v1133_v41  ;;  %v1134_v44 = vadd.f32 %v1604_v12, %v853_v38 }
 0x178   :  { %1162 = vst [vmem:[#allocation7 + $0x78] sm:$0xff] %v1104_v43  ;;  %1192 = vst [vmem:[#allocation7 + $0x168] sm:$0xff] %v1134_v44 }
 0x17b   :  { %v738_v45 = vpop.f32.mrb[32].mxu0  ;;  %v858_v46 = vpop.f32.mrb[32].mxu1 }
 0x17c   :  { %v740_v47 = vpop.f32.mrb[33].mxu0  ;;  %v860_v48 = vpop.f32.mrb[33].mxu1  ;;  %v1105_v51 = vadd.f32 %v1604_v12, %v738_v45  ;;  %v1135_v53 = vadd.f32 %v1604_v12, %v858_v46 }
 0x17d   :  { %v741_v49 = vpop.f32.mrb[34].mxu0  ;;  %v861_v50 = vpop.f32.mrb[34].mxu1 }
 0x17e   :  { %v743_v52 = vpop.f32.mrb[35].mxu0  ;;  %v863_v54 = vpop.f32.mrb[35].mxu1  ;;  %1163 = vst [vmem:[#allocation7 + $0x80] sm:$0xff] %v1105_v51  ;;  %v1106_v55 = vadd.f32 %v1604_v12, %v741_v49  ;;  %1193 = vst [vmem:[#allocation7 + $0x170] sm:$0xff] %v1135_v53  ;;  %v1136_v56 = vadd.f32 %v1604_v12, %v861_v50 }
 0x180   :  { %1164 = vst [vmem:[#allocation7 + $0x88] sm:$0xff] %v1106_v55  ;;  %1194 = vst [vmem:[#allocation7 + $0x178] sm:$0xff] %v1136_v56 }
 0x183   :  { %v746_v57 = vpop.f32.mrb[36].mxu0  ;;  %v866_v58 = vpop.f32.mrb[36].mxu1 }
 0x184   :  { %v748_v59 = vpop.f32.mrb[37].mxu0  ;;  %v868_v60 = vpop.f32.mrb[37].mxu1  ;;  %v1107_v63 = vadd.f32 %v1604_v12, %v746_v57  ;;  %v1137_v1 = vadd.f32 %v1604_v12, %v866_v58 }
 0x185   :  { %v749_v61 = vpop.f32.mrb[38].mxu0  ;;  %v869_v62 = vpop.f32.mrb[38].mxu1 }
 0x186   :  { %v751_v0 = vpop.f32.mrb[39].mxu0  ;;  %v871_v2 = vpop.f32.mrb[39].mxu1  ;;  %1165 = vst [vmem:[#allocation7 + $0x90] sm:$0xff] %v1107_v63  ;;  %v1108_v3 = vadd.f32 %v1604_v12, %v749_v61  ;;  %1195 = vst [vmem:[#allocation7 + $0x180] sm:$0xff] %v1137_v1  ;;  %v1138_v4 = vadd.f32 %v1604_v12, %v869_v62 }
 0x188   :  { %1166 = vst [vmem:[#allocation7 + $0x98] sm:$0xff] %v1108_v3  ;;  %1196 = vst [vmem:[#allocation7 + $0x188] sm:$0xff] %v1138_v4 }
 0x18b   :  { %v754_v5 = vpop.f32.mrb[40].mxu0  ;;  %v874_v6 = vpop.f32.mrb[40].mxu1 }
 0x18c   :  { %v756_v7 = vpop.f32.mrb[41].mxu0  ;;  %v876_v8 = vpop.f32.mrb[41].mxu1  ;;  %v1109_v11 = vadd.f32 %v1604_v12, %v754_v5  ;;  %v1139_v14 = vadd.f32 %v1604_v12, %v874_v6 }
 0x18d   :  { %v757_v9 = vpop.f32.mrb[42].mxu0  ;;  %v877_v10 = vpop.f32.mrb[42].mxu1 }
 0x18e   :  { %v759_v13 = vpop.f32.mrb[43].mxu0  ;;  %v879_v15 = vpop.f32.mrb[43].mxu1  ;;  %1167 = vst [vmem:[#allocation7 + $0xa0] sm:$0xff] %v1109_v11  ;;  %v1110_v16 = vadd.f32 %v1604_v12, %v757_v9  ;;  %1197 = vst [vmem:[#allocation7 + $0x190] sm:$0xff] %v1139_v14  ;;  %v1140_v17 = vadd.f32 %v1604_v12, %v877_v10 }
 0x190   :  { %1168 = vst [vmem:[#allocation7 + $0xa8] sm:$0xff] %v1110_v16  ;;  %1198 = vst [vmem:[#allocation7 + $0x198] sm:$0xff] %v1140_v17 }
 0x193   :  { %v762_v18 = vpop.f32.mrb[44].mxu0  ;;  %v882_v19 = vpop.f32.mrb[44].mxu1 }
 0x194   :  { %v764_v20 = vpop.f32.mrb[45].mxu0  ;;  %v884_v21 = vpop.f32.mrb[45].mxu1  ;;  %v1111_v24 = vadd.f32 %v1604_v12, %v762_v18  ;;  %v1141_v26 = vadd.f32 %v1604_v12, %v882_v19 }
 0x195   :  { %v765_v22 = vpop.f32.mrb[46].mxu0  ;;  %v885_v23 = vpop.f32.mrb[46].mxu1 }
 0x196   :  { %v767_v25 = vpop.f32.mrb[47].mxu0  ;;  %v887_v27 = vpop.f32.mrb[47].mxu1  ;;  %1169 = vst [vmem:[#allocation7 + $0xb0] sm:$0xff] %v1111_v24  ;;  %v1112_v28 = vadd.f32 %v1604_v12, %v765_v22  ;;  %1199 = vst [vmem:[#allocation7 + $0x1a0] sm:$0xff] %v1141_v26  ;;  %v1142_v29 = vadd.f32 %v1604_v12, %v885_v23 }
 0x198   :  { %1170 = vst [vmem:[#allocation7 + $0xb8] sm:$0xff] %v1112_v28  ;;  %1200 = vst [vmem:[#allocation7 + $0x1a8] sm:$0xff] %v1142_v29 }
 0x19b   :  { %v770_v30 = vpop.f32.mrb[48].mxu0  ;;  %v890_v31 = vpop.f32.mrb[48].mxu1 }
 0x19c   :  { %v772_v32 = vpop.f32.mrb[49].mxu0  ;;  %v892_v33 = vpop.f32.mrb[49].mxu1  ;;  %v1113_v36 = vadd.f32 %v1604_v12, %v770_v30  ;;  %v1143_v38 = vadd.f32 %v1604_v12, %v890_v31 }
 0x19d   :  { %v773_v34 = vpop.f32.mrb[50].mxu0  ;;  %v893_v35 = vpop.f32.mrb[50].mxu1 }
 0x19e   :  { %v775_v37 = vpop.f32.mrb[51].mxu0  ;;  %v895_v39 = vpop.f32.mrb[51].mxu1  ;;  %1171 = vst [vmem:[#allocation7 + $0xc0] sm:$0xff] %v1113_v36  ;;  %v1114_v40 = vadd.f32 %v1604_v12, %v773_v34  ;;  %1201 = vst [vmem:[#allocation7 + $0x1b0] sm:$0xff] %v1143_v38  ;;  %v1144_v41 = vadd.f32 %v1604_v12, %v893_v35 }
 0x1a0   :  { %1172 = vst [vmem:[#allocation7 + $0xc8] sm:$0xff] %v1114_v40  ;;  %1202 = vst [vmem:[#allocation7 + $0x1b8] sm:$0xff] %v1144_v41 }
 0x1a3   :  { %v778_v42 = vpop.f32.mrb[52].mxu0  ;;  %v898_v43 = vpop.f32.mrb[52].mxu1 }
 0x1a4   :  { %v780_v44 = vpop.f32.mrb[53].mxu0  ;;  %v900_v45 = vpop.f32.mrb[53].mxu1  ;;  %v1115_v48 = vadd.f32 %v1604_v12, %v778_v42  ;;  %v1145_v50 = vadd.f32 %v1604_v12, %v898_v43 }
 0x1a5   :  { %v781_v46 = vpop.f32.mrb[54].mxu0  ;;  %v901_v47 = vpop.f32.mrb[54].mxu1 }
 0x1a6   :  { %v783_v49 = vpop.f32.mrb[55].mxu0  ;;  %v903_v51 = vpop.f32.mrb[55].mxu1  ;;  %1173 = vst [vmem:[#allocation7 + $0xd0] sm:$0xff] %v1115_v48  ;;  %v1116_v52 = vadd.f32 %v1604_v12, %v781_v46  ;;  %1203 = vst [vmem:[#allocation7 + $0x1c0] sm:$0xff] %v1145_v50  ;;  %v1146_v53 = vadd.f32 %v1604_v12, %v901_v47 }
 0x1a8   :  { %1174 = vst [vmem:[#allocation7 + $0xd8] sm:$0xff] %v1116_v52  ;;  %1204 = vst [vmem:[#allocation7 + $0x1c8] sm:$0xff] %v1146_v53 }
 0x1ab   :  { %v786_v54 = vpop.f32.mrb[56].mxu0 }
 0x1ac   :  { %v788_v55 = vpop.f32.mrb[57].mxu0  ;;  %v1117_v57 = vadd.f32 %v1604_v12, %v786_v54 }
 0x1ad   :  { %v789_v56 = vpop.f32.mrb[58].mxu0 }
 0x1ae   :  { %v791_v58 = vpop.f32.mrb[59].mxu0  ;;  %1175 = vst [vmem:[#allocation7 + $0xe0] sm:$0xff] %v1117_v57  ;;  %v1118_v59 = vadd.f32 %v1604_v12, %v789_v56 }
 0x1b0   :  { %1176 = vst [vmem:[#allocation7 + $0xe8] sm:$0xff] %v1118_v59 }
 0x1b1   :  { %1497 = shalt.err (!%p1494_p6)
}
 0x1b2   :  { %s1498_s17 = scalar_lea.hbm %s1682_s3, 7424 }
 0x1b3   :  { %p1499_p7 = scmp.ne.s32.totalorder %s1682_s3, %s1498_s17  ;;  %p1502_p8 = scmp.lt.u32.totalorder %s1498_s17, %s1682_s3 }
 0x1b5   :  { %p1504_p9 = pnand %p1502_p8, %p1499_p7 }
 0x1b7   :  { %1507 = shalt.err (!%p1504_p9)
}
 0x1b8   :  { %1216 = dma.vmem_to_hbm [thread:$0]  %s1211_s13, 7424, %s1682_s3, [#allocation4], %s1515_s22, %s1515_s22, %s1516_s23  }
 0x1b9   :  { %1512 = dma.done.wait [#allocation4], 7424  }
 0x1ba   :  { %1513 = vsyncadd [#allocation4], 4294959872 }
 0x1bb   :  { %1220 = vsyncpa [#allocation3], 1 }
 0x1bc   :  { %1221 = vsyncpa [#allocation6], 1 }
 0x1bd   :  { %1222 = vsyncpa [#allocation4], 1 }

</bundles_post_ra>
